<compile_context>
chip_gen: v6e
topology: v6e:2x2x1
jax: 0.10.0
libtpu: 0.0.40
codegen_flags: <defaults>
</compile_context>

<pallas_src>
import numpy as np
import jax
import jax.numpy as jnp
from jax import lax
from jax.experimental import pallas as pl
from jax.experimental.pallas import tpu as pltpu

_EPS = 1e-5


def _make_kernel(H, W, Cp):
    HW = H * W
    pow2_w = (W & (W - 1)) == 0
    log2_w = W.bit_length() - 1

    def kernel(x_ref, w1_ref, b1_ref, s1_ref, t1_ref,
               w2_ref, b2_ref, s2_ref, t2_ref, out_ref):
        # x_ref  : (1, Cp, H*W)  image, channels on sublanes, pixels lane-dense
        # w*_ref : (Cp, 9*Cp)    im2col conv weights (tap-major, channel-minor cols)
        # b/s/t  : (Cp, 1)       conv bias / folded-BN scale / folded-BN shift
        # out_ref: (1, Cp, H*W)
        x = x_ref[0]                                            # (Cp, HW) f32

        # Per-pixel row/col indices for the border masks (computed once).
        p_idx = lax.broadcasted_iota(jnp.int32, (Cp, HW), 1)
        if pow2_w:
            i_idx = p_idx >> log2_w
            j_idx = p_idx & (W - 1)
        else:                                    # generic path (not hit here)
            i_idx = p_idx // W
            j_idx = p_idx % W
        row_ok = {dh: (i_idx + dh >= 0) & (i_idx + dh < H) for dh in (-1, 1)}
        col_ok = {dw: (j_idx + dw >= 0) & (j_idx + dw < W) for dw in (-1, 1)}
        col_wrap = {dw: ~col_ok[dw] for dw in (-1, 1)}

        def shifted_taps(a, periodic_w):
            """im2col patch (9*Cp, HW): 9 tap-shifted copies of `a`, (kh, kw) order."""
            pieces = []
            for dh in (-1, 0, 1):
                for dw in (-1, 0, 1):
                    s = dh * W + dw
                    v = a if s == 0 else pltpu.roll(a, (-s) % HW, 1)
                    if dw != 0:
                        if periodic_w:
                            # Wrap-around column takes the value from the other
                            # end of the SAME row (periodic padding along W).
                            v_fix = pltpu.roll(a, (-(s - dw * W)) % HW, 1)
                            v = jnp.where(col_wrap[dw], v_fix, v)
                        else:
                            v = jnp.where(col_ok[dw], v, 0.0)   # zero pad along W
                    if dh != 0:
                        v = jnp.where(row_ok[dh], v, 0.0)       # zero pad along H
                    pieces.append(v)
            return jnp.concatenate(pieces, axis=0)              # (9*Cp, HW)

        # ---- conv1 (periodic W / zero H padding) as a single im2col matmul ----
        y = jnp.dot(w1_ref[...], shifted_taps(x, periodic_w=True),
                    preferred_element_type=jnp.float32)         # (Cp, HW)
        y = jnp.maximum(y + b1_ref[...], 0.0)                   # bias + ReLU
        y = y * s1_ref[...] + t1_ref[...]                       # BatchNorm1 (eval, folded)
        # TODO(synk): Dropout(0.1) is stochastic only in train mode; eval => identity.

        # ---- conv2 (zero padding=1 on both H and W) ----
        y2 = jnp.dot(w2_ref[...], shifted_taps(y, periodic_w=False),
                     preferred_element_type=jnp.float32)        # (Cp, HW)
        y2 = jnp.maximum(y2 + b2_ref[...], 0.0)                 # bias + ReLU
        y2 = y2 * s2_ref[...] + t2_ref[...]                     # BatchNorm2 (eval, folded)

        # ---- identity-shortcut residual add (reuses the same input block) ----
        out_ref[0] = (y2 + x).astype(out_ref.dtype)

    return kernel


def residual_block_pallas(x_nchw, params):
    """ResidualBlock forward. Input/output in PyTorch NCHW layout."""
    x = x_nchw.astype(jnp.float32)
    N, Cin, H, W = x.shape
    Cout = params["w1"].shape[-1]
    # TODO(synk): 1x1-conv + BN shortcut branch (in_channels != out_channels) not implemented.
    assert Cin == Cout, "Only the Identity-shortcut configuration is implemented."
    C = Cout
    Cp = ((C + 7) // 8) * 8          # pad channels up to the 8-sublane tile
    HW = H * W

    # Fold eval-mode BatchNorm into per-channel scale / shift.
    s1 = params["bn1_gamma"] / jnp.sqrt(params["bn1_var"] + _EPS)
    t1 = params["bn1_beta"] - params["bn1_mean"] * s1
    s2 = params["bn2_gamma"] / jnp.sqrt(params["bn2_var"] + _EPS)
    t2 = params["bn2_beta"] - params["bn2_mean"] * s2

    def col(v):                      # (C,) -> (Cp, 1) zero-padded column
        v = v.astype(jnp.float32).reshape(C, 1)
        return jnp.pad(v, ((0, Cp - C), (0, 0)))

    def wmat(w):                     # HWIO (3,3,C,C) -> (Cp, 9*Cp), tap-major columns
        wp = jnp.zeros((3, 3, Cp, Cp), jnp.float32).at[:, :, :C, :C].set(
            w.astype(jnp.float32))
        return jnp.transpose(wp, (3, 0, 1, 2)).reshape(Cp, 9 * Cp)

    # NCHW -> (N, Cp, H*W): lane-dense pixels; pure reshape + channel zero-pad.
    xk = jnp.pad(x.reshape(N, C, HW), ((0, 0), (0, Cp - C), (0, 0)))

    vec_spec = pl.BlockSpec((Cp, 1), lambda n: (0, 0))
    w_spec = pl.BlockSpec((Cp, 9 * Cp), lambda n: (0, 0))
    out = pl.pallas_call(
        _make_kernel(H, W, Cp),
        out_shape=jax.ShapeDtypeStruct((N, Cp, HW), jnp.float32),
        grid_spec=pltpu.PrefetchScalarGridSpec(
            num_scalar_prefetch=0,
            grid=(N,),                                   # one image per grid step
            in_specs=[
                pl.BlockSpec((1, Cp, HW), lambda n: (n, 0, 0)),
                w_spec, vec_spec, vec_spec, vec_spec,
                w_spec, vec_spec, vec_spec, vec_spec,
            ],
            out_specs=pl.BlockSpec((1, Cp, HW), lambda n: (n, 0, 0)),
        ),
        compiler_params=pltpu.CompilerParams(
            dimension_semantics=("parallel",)),          # shard batch over TCs (v7x)
    )(xk,
      wmat(params["w1"]), col(params["b1"]), col(s1), col(t1),
      wmat(params["w2"]), col(params["b2"]), col(s2), col(t2))

    return out[:, :C, :].reshape(N, C, H, W)


def residual_block_reference(x_nchw, params):
    """Pure-JAX reference for the same (eval-mode) forward pass."""
    x = jnp.transpose(x_nchw, (0, 2, 3, 1)).astype(jnp.float32)
    xp = jnp.concatenate([x[:, :, -1:, :], x, x[:, :, :1, :]], axis=2)
    xp = jnp.pad(xp, ((0, 0), (1, 1), (0, 0), (0, 0)))
    dn = ("NHWC", "HWIO", "NHWC")
    y = lax.conv_general_dilated(xp, params["w1"], (1, 1), "VALID",
                                 dimension_numbers=dn) + params["b1"]
    y = jnp.maximum(y, 0.0)
    y = (y - params["bn1_mean"]) / jnp.sqrt(params["bn1_var"] + _EPS) \
        * params["bn1_gamma"] + params["bn1_beta"]
    y = lax.conv_general_dilated(y, params["w2"], (1, 1), "SAME",
                                 dimension_numbers=dn) + params["b2"]
    y = jnp.maximum(y, 0.0)
    y = (y - params["bn2_mean"]) / jnp.sqrt(params["bn2_var"] + _EPS) \
        * params["bn2_gamma"] + params["bn2_beta"]
    y = y + x
    return jnp.transpose(y, (0, 3, 1, 2))


def make_params(key, c_in, c_out):
    ks = jax.random.split(key, 12)
    return {
        "w1": 0.1 * jax.random.normal(ks[0], (3, 3, c_in, c_out), jnp.float32),
        "b1": 0.1 * jax.random.normal(ks[1], (c_out,), jnp.float32),
        "bn1_gamma": 1.0 + 0.1 * jax.random.normal(ks[2], (c_out,), jnp.float32),
        "bn1_beta": 0.1 * jax.random.normal(ks[3], (c_out,), jnp.float32),
        "bn1_mean": 0.1 * jax.random.normal(ks[4], (c_out,), jnp.float32),
        "bn1_var": 0.5 + jnp.abs(jax.random.normal(ks[5], (c_out,), jnp.float32)),
        "w2": 0.1 * jax.random.normal(ks[6], (3, 3, c_out, c_out), jnp.float32),
        "b2": 0.1 * jax.random.normal(ks[7], (c_out,), jnp.float32),
        "bn2_gamma": 1.0 + 0.1 * jax.random.normal(ks[8], (c_out,), jnp.float32),
        "bn2_beta": 0.1 * jax.random.normal(ks[9], (c_out,), jnp.float32),
        "bn2_mean": 0.1 * jax.random.normal(ks[10], (c_out,), jnp.float32),
        "bn2_var": 0.5 + jnp.abs(jax.random.normal(ks[11], (c_out,), jnp.float32)),
    }


if __name__ == "__main__":
    key = jax.random.PRNGKey(0)
    k_x, k_p = jax.random.split(key)

    N, C, H, W = 2, 4, 16, 16               # small shapes, in_channels == out_channels
    x = jax.random.normal(k_x, (N, C, H, W), jnp.float32)   # PyTorch NCHW input
    params = make_params(k_p, C, C)

    out = jax.block_until_ready(residual_block_pallas(x, params))
    ref = jax.block_until_ready(residual_block_reference(x, params))
    np.testing.assert_allclose(np.asarray(out), np.asarray(ref),
                               rtol=1e-2, atol=1e-2)
    assert out.shape == (N, C, H, W)
    print("KERNEL_OK")
</pallas_src>

<mosaic_0001>
module attributes {stable_mosaic.version = 11 : i64} {
  func.func @kernel(%arg0: i32, %arg1: memref<1x8x256xf32, #tpu.memory_space<vmem>>, %arg2: memref<8x72xf32, #tpu.memory_space<vmem>>, %arg3: memref<8x1xf32, #tpu.memory_space<vmem>>, %arg4: memref<8x1xf32, #tpu.memory_space<vmem>>, %arg5: memref<8x1xf32, #tpu.memory_space<vmem>>, %arg6: memref<8x72xf32, #tpu.memory_space<vmem>>, %arg7: memref<8x1xf32, #tpu.memory_space<vmem>>, %arg8: memref<8x1xf32, #tpu.memory_space<vmem>>, %arg9: memref<8x1xf32, #tpu.memory_space<vmem>>, %arg10: memref<1x8x256xf32, #tpu.memory_space<vmem>>) attributes {dimension_semantics = [#tpu.dimension_semantics<parallel>], iteration_bounds = array<i64: 2>, scalar_prefetch = 0 : i64, scratch_operands = 0 : i64, tpu.core_type = #tpu.core_type<tc>, window_params = [{transform_indices = @transform_0, window_bounds = array<i64: 1, 8, 256>}, {pipeline_mode = #tpu.pipeline_mode<synchronous>, transform_indices = @transform_1, window_bounds = array<i64: 8, 72>}, {pipeline_mode = #tpu.pipeline_mode<synchronous>, transform_indices = @transform_2, window_bounds = array<i64: 8, 1>}, {pipeline_mode = #tpu.pipeline_mode<synchronous>, transform_indices = @transform_3, window_bounds = array<i64: 8, 1>}, {pipeline_mode = #tpu.pipeline_mode<synchronous>, transform_indices = @transform_4, window_bounds = array<i64: 8, 1>}, {pipeline_mode = #tpu.pipeline_mode<synchronous>, transform_indices = @transform_5, window_bounds = array<i64: 8, 72>}, {pipeline_mode = #tpu.pipeline_mode<synchronous>, transform_indices = @transform_6, window_bounds = array<i64: 8, 1>}, {pipeline_mode = #tpu.pipeline_mode<synchronous>, transform_indices = @transform_7, window_bounds = array<i64: 8, 1>}, {pipeline_mode = #tpu.pipeline_mode<synchronous>, transform_indices = @transform_8, window_bounds = array<i64: 8, 1>}, {transform_indices = @transform_9, window_bounds = array<i64: 1, 8, 256>}]} {
    %c0 = arith.constant 0 : index
    %c0_0 = arith.constant 0 : index
    %c0_1 = arith.constant 0 : index
    %0 = vector.load %arg1[%c0, %c0_0, %c0_1] : memref<1x8x256xf32, #tpu.memory_space<vmem>>, vector<1x8x256xf32>
    %1 = vector.shape_cast %0 : vector<1x8x256xf32> to vector<8x256xf32>
    %2 = tpu.iota {dimensions = array<i32: 1>} : vector<8x256xi32>
    %c4_i32 = arith.constant 4 : i32
    %3 = vector.broadcast %c4_i32 : i32 to vector<8x256xi32>
    %4 = arith.shrsi %2, %3 : vector<8x256xi32>
    %c15_i32 = arith.constant 15 : i32
    %5 = vector.broadcast %c15_i32 : i32 to vector<8x256xi32>
    %6 = arith.andi %2, %5 : vector<8x256xi32>
    %c-1_i32 = arith.constant -1 : i32
    %7 = vector.broadcast %c-1_i32 : i32 to vector<8x256xi32>
    %8 = arith.addi %4, %7 : vector<8x256xi32>
    %c0_i32 = arith.constant 0 : i32
    %9 = vector.broadcast %c0_i32 : i32 to vector<8x256xi32>
    %10 = arith.cmpi sge, %8, %9 : vector<8x256xi32>
    %c-1_i32_2 = arith.constant -1 : i32
    %11 = vector.broadcast %c-1_i32_2 : i32 to vector<8x256xi32>
    %12 = arith.addi %4, %11 : vector<8x256xi32>
    %c16_i32 = arith.constant 16 : i32
    %13 = vector.broadcast %c16_i32 : i32 to vector<8x256xi32>
    %14 = arith.cmpi slt, %12, %13 : vector<8x256xi32>
    %15 = arith.andi %10, %14 : vector<8x256xi1>
    %c1_i32 = arith.constant 1 : i32
    %16 = vector.broadcast %c1_i32 : i32 to vector<8x256xi32>
    %17 = arith.addi %4, %16 : vector<8x256xi32>
    %c0_i32_3 = arith.constant 0 : i32
    %18 = vector.broadcast %c0_i32_3 : i32 to vector<8x256xi32>
    %19 = arith.cmpi sge, %17, %18 : vector<8x256xi32>
    %c1_i32_4 = arith.constant 1 : i32
    %20 = vector.broadcast %c1_i32_4 : i32 to vector<8x256xi32>
    %21 = arith.addi %4, %20 : vector<8x256xi32>
    %c16_i32_5 = arith.constant 16 : i32
    %22 = vector.broadcast %c16_i32_5 : i32 to vector<8x256xi32>
    %23 = arith.cmpi slt, %21, %22 : vector<8x256xi32>
    %24 = arith.andi %19, %23 : vector<8x256xi1>
    %c-1_i32_6 = arith.constant -1 : i32
    %25 = vector.broadcast %c-1_i32_6 : i32 to vector<8x256xi32>
    %26 = arith.addi %6, %25 : vector<8x256xi32>
    %c0_i32_7 = arith.constant 0 : i32
    %27 = vector.broadcast %c0_i32_7 : i32 to vector<8x256xi32>
    %28 = arith.cmpi sge, %26, %27 : vector<8x256xi32>
    %c-1_i32_8 = arith.constant -1 : i32
    %29 = vector.broadcast %c-1_i32_8 : i32 to vector<8x256xi32>
    %30 = arith.addi %6, %29 : vector<8x256xi32>
    %c16_i32_9 = arith.constant 16 : i32
    %31 = vector.broadcast %c16_i32_9 : i32 to vector<8x256xi32>
    %32 = arith.cmpi slt, %30, %31 : vector<8x256xi32>
    %33 = arith.andi %28, %32 : vector<8x256xi1>
    %c1_i32_10 = arith.constant 1 : i32
    %34 = vector.broadcast %c1_i32_10 : i32 to vector<8x256xi32>
    %35 = arith.addi %6, %34 : vector<8x256xi32>
    %c0_i32_11 = arith.constant 0 : i32
    %36 = vector.broadcast %c0_i32_11 : i32 to vector<8x256xi32>
    %37 = arith.cmpi sge, %35, %36 : vector<8x256xi32>
    %c1_i32_12 = arith.constant 1 : i32
    %38 = vector.broadcast %c1_i32_12 : i32 to vector<8x256xi32>
    %39 = arith.addi %6, %38 : vector<8x256xi32>
    %c16_i32_13 = arith.constant 16 : i32
    %40 = vector.broadcast %c16_i32_13 : i32 to vector<8x256xi32>
    %41 = arith.cmpi slt, %39, %40 : vector<8x256xi32>
    %42 = arith.andi %37, %41 : vector<8x256xi1>
    %cst = arith.constant dense<true> : vector<8x256xi1>
    %43 = arith.xori %33, %cst : vector<8x256xi1>
    %cst_14 = arith.constant dense<true> : vector<8x256xi1>
    %44 = arith.xori %42, %cst_14 : vector<8x256xi1>
    %c0_15 = arith.constant 0 : index
    %c0_16 = arith.constant 0 : index
    %45 = vector.load %arg2[%c0_15, %c0_16] : memref<8x72xf32, #tpu.memory_space<vmem>>, vector<8x72xf32>
    %c17_i32 = arith.constant 17 : i32
    %46 = tpu.dynamic_rotate %1 by %c17_i32 dim 1 : vector<8x256xf32>, i32 -> vector<8x256xf32>
    %c1_i32_17 = arith.constant 1 : i32
    %47 = tpu.dynamic_rotate %1 by %c1_i32_17 dim 1 : vector<8x256xf32>, i32 -> vector<8x256xf32>
    %48 = arith.select %43, %47, %46 : vector<8x256xi1>, vector<8x256xf32>
    %cst_18 = arith.constant 0.000000e+00 : f32
    %49 = vector.broadcast %cst_18 : f32 to vector<8x256xf32>
    %50 = arith.select %15, %48, %49 : vector<8x256xi1>, vector<8x256xf32>
    %c16_i32_19 = arith.constant 16 : i32
    %51 = tpu.dynamic_rotate %1 by %c16_i32_19 dim 1 : vector<8x256xf32>, i32 -> vector<8x256xf32>
    %cst_20 = arith.constant 0.000000e+00 : f32
    %52 = vector.broadcast %cst_20 : f32 to vector<8x256xf32>
    %53 = arith.select %15, %51, %52 : vector<8x256xi1>, vector<8x256xf32>
    %c15_i32_21 = arith.constant 15 : i32
    %54 = tpu.dynamic_rotate %1 by %c15_i32_21 dim 1 : vector<8x256xf32>, i32 -> vector<8x256xf32>
    %c31_i32 = arith.constant 31 : i32
    %55 = tpu.dynamic_rotate %1 by %c31_i32 dim 1 : vector<8x256xf32>, i32 -> vector<8x256xf32>
    %56 = arith.select %44, %55, %54 : vector<8x256xi1>, vector<8x256xf32>
    %cst_22 = arith.constant 0.000000e+00 : f32
    %57 = vector.broadcast %cst_22 : f32 to vector<8x256xf32>
    %58 = arith.select %15, %56, %57 : vector<8x256xi1>, vector<8x256xf32>
    %c1_i32_23 = arith.constant 1 : i32
    %59 = tpu.dynamic_rotate %1 by %c1_i32_23 dim 1 : vector<8x256xf32>, i32 -> vector<8x256xf32>
    %c241_i32 = arith.constant 241 : i32
    %60 = tpu.dynamic_rotate %1 by %c241_i32 dim 1 : vector<8x256xf32>, i32 -> vector<8x256xf32>
    %61 = arith.select %43, %60, %59 : vector<8x256xi1>, vector<8x256xf32>
    %c255_i32 = arith.constant 255 : i32
    %62 = tpu.dynamic_rotate %1 by %c255_i32 dim 1 : vector<8x256xf32>, i32 -> vector<8x256xf32>
    %c15_i32_24 = arith.constant 15 : i32
    %63 = tpu.dynamic_rotate %1 by %c15_i32_24 dim 1 : vector<8x256xf32>, i32 -> vector<8x256xf32>
    %64 = arith.select %44, %63, %62 : vector<8x256xi1>, vector<8x256xf32>
    %c241_i32_25 = arith.constant 241 : i32
    %65 = tpu.dynamic_rotate %1 by %c241_i32_25 dim 1 : vector<8x256xf32>, i32 -> vector<8x256xf32>
    %c225_i32 = arith.constant 225 : i32
    %66 = tpu.dynamic_rotate %1 by %c225_i32 dim 1 : vector<8x256xf32>, i32 -> vector<8x256xf32>
    %67 = arith.select %43, %66, %65 : vector<8x256xi1>, vector<8x256xf32>
    %cst_26 = arith.constant 0.000000e+00 : f32
    %68 = vector.broadcast %cst_26 : f32 to vector<8x256xf32>
    %69 = arith.select %24, %67, %68 : vector<8x256xi1>, vector<8x256xf32>
    %c240_i32 = arith.constant 240 : i32
    %70 = tpu.dynamic_rotate %1 by %c240_i32 dim 1 : vector<8x256xf32>, i32 -> vector<8x256xf32>
    %cst_27 = arith.constant 0.000000e+00 : f32
    %71 = vector.broadcast %cst_27 : f32 to vector<8x256xf32>
    %72 = arith.select %24, %70, %71 : vector<8x256xi1>, vector<8x256xf32>
    %c239_i32 = arith.constant 239 : i32
    %73 = tpu.dynamic_rotate %1 by %c239_i32 dim 1 : vector<8x256xf32>, i32 -> vector<8x256xf32>
    %c255_i32_28 = arith.constant 255 : i32
    %74 = tpu.dynamic_rotate %1 by %c255_i32_28 dim 1 : vector<8x256xf32>, i32 -> vector<8x256xf32>
    %75 = arith.select %44, %74, %73 : vector<8x256xi1>, vector<8x256xf32>
    %cst_29 = arith.constant 0.000000e+00 : f32
    %76 = vector.broadcast %cst_29 : f32 to vector<8x256xf32>
    %77 = arith.select %24, %75, %76 : vector<8x256xi1>, vector<8x256xf32>
    %78 = tpu.concatenate %50, %53, %58, %61, %1, %64, %69, %72, %77 in 0 : vector<8x256xf32>, vector<8x256xf32>, vector<8x256xf32>, vector<8x256xf32>, vector<8x256xf32>, vector<8x256xf32>, vector<8x256xf32>, vector<8x256xf32>, vector<8x256xf32> -> vector<72x256xf32>
    %cst_30 = arith.constant dense<0.000000e+00> : vector<8x256xf32>
    %79 = tpu.matmul %45, %78, %cst_30 {dimension_numbers = #tpu.dot_dimension_numbers<[1], [0], [0], [1], [0, 0, 1, 1], [], []>} : vector<8x72xf32>, vector<72x256xf32>, vector<8x256xf32> -> vector<8x256xf32>
    %c0_31 = arith.constant 0 : index
    %c0_32 = arith.constant 0 : index
    %80 = vector.load %arg3[%c0_31, %c0_32] : memref<8x1xf32, #tpu.memory_space<vmem>>, vector<8x1xf32>
    %81 = vector.broadcast %80 : vector<8x1xf32> to vector<8x256xf32>
    %82 = arith.addf %79, %81 : vector<8x256xf32>
    %cst_33 = arith.constant 0.000000e+00 : f32
    %83 = vector.broadcast %cst_33 : f32 to vector<8x256xf32>
    %84 = arith.maximumf %82, %83 : vector<8x256xf32>
    %c0_34 = arith.constant 0 : index
    %c0_35 = arith.constant 0 : index
    %85 = vector.load %arg4[%c0_34, %c0_35] : memref<8x1xf32, #tpu.memory_space<vmem>>, vector<8x1xf32>
    %86 = vector.broadcast %85 : vector<8x1xf32> to vector<8x256xf32>
    %87 = arith.mulf %84, %86 : vector<8x256xf32>
    %c0_36 = arith.constant 0 : index
    %c0_37 = arith.constant 0 : index
    %88 = vector.load %arg5[%c0_36, %c0_37] : memref<8x1xf32, #tpu.memory_space<vmem>>, vector<8x1xf32>
    %89 = vector.broadcast %88 : vector<8x1xf32> to vector<8x256xf32>
    %90 = arith.addf %87, %89 : vector<8x256xf32>
    %c0_38 = arith.constant 0 : index
    %c0_39 = arith.constant 0 : index
    %91 = vector.load %arg6[%c0_38, %c0_39] : memref<8x72xf32, #tpu.memory_space<vmem>>, vector<8x72xf32>
    %c17_i32_40 = arith.constant 17 : i32
    %92 = tpu.dynamic_rotate %90 by %c17_i32_40 dim 1 : vector<8x256xf32>, i32 -> vector<8x256xf32>
    %cst_41 = arith.constant 0.000000e+00 : f32
    %93 = vector.broadcast %cst_41 : f32 to vector<8x256xf32>
    %94 = arith.select %33, %92, %93 : vector<8x256xi1>, vector<8x256xf32>
    %cst_42 = arith.constant 0.000000e+00 : f32
    %95 = vector.broadcast %cst_42 : f32 to vector<8x256xf32>
    %96 = arith.select %15, %94, %95 : vector<8x256xi1>, vector<8x256xf32>
    %c16_i32_43 = arith.constant 16 : i32
    %97 = tpu.dynamic_rotate %90 by %c16_i32_43 dim 1 : vector<8x256xf32>, i32 -> vector<8x256xf32>
    %cst_44 = arith.constant 0.000000e+00 : f32
    %98 = vector.broadcast %cst_44 : f32 to vector<8x256xf32>
    %99 = arith.select %15, %97, %98 : vector<8x256xi1>, vector<8x256xf32>
    %c15_i32_45 = arith.constant 15 : i32
    %100 = tpu.dynamic_rotate %90 by %c15_i32_45 dim 1 : vector<8x256xf32>, i32 -> vector<8x256xf32>
    %cst_46 = arith.constant 0.000000e+00 : f32
    %101 = vector.broadcast %cst_46 : f32 to vector<8x256xf32>
    %102 = arith.select %42, %100, %101 : vector<8x256xi1>, vector<8x256xf32>
    %cst_47 = arith.constant 0.000000e+00 : f32
    %103 = vector.broadcast %cst_47 : f32 to vector<8x256xf32>
    %104 = arith.select %15, %102, %103 : vector<8x256xi1>, vector<8x256xf32>
    %c1_i32_48 = arith.constant 1 : i32
    %105 = tpu.dynamic_rotate %90 by %c1_i32_48 dim 1 : vector<8x256xf32>, i32 -> vector<8x256xf32>
    %cst_49 = arith.constant 0.000000e+00 : f32
    %106 = vector.broadcast %cst_49 : f32 to vector<8x256xf32>
    %107 = arith.select %33, %105, %106 : vector<8x256xi1>, vector<8x256xf32>
    %c255_i32_50 = arith.constant 255 : i32
    %108 = tpu.dynamic_rotate %90 by %c255_i32_50 dim 1 : vector<8x256xf32>, i32 -> vector<8x256xf32>
    %cst_51 = arith.constant 0.000000e+00 : f32
    %109 = vector.broadcast %cst_51 : f32 to vector<8x256xf32>
    %110 = arith.select %42, %108, %109 : vector<8x256xi1>, vector<8x256xf32>
    %c241_i32_52 = arith.constant 241 : i32
    %111 = tpu.dynamic_rotate %90 by %c241_i32_52 dim 1 : vector<8x256xf32>, i32 -> vector<8x256xf32>
    %cst_53 = arith.constant 0.000000e+00 : f32
    %112 = vector.broadcast %cst_53 : f32 to vector<8x256xf32>
    %113 = arith.select %33, %111, %112 : vector<8x256xi1>, vector<8x256xf32>
    %cst_54 = arith.constant 0.000000e+00 : f32
    %114 = vector.broadcast %cst_54 : f32 to vector<8x256xf32>
    %115 = arith.select %24, %113, %114 : vector<8x256xi1>, vector<8x256xf32>
    %c240_i32_55 = arith.constant 240 : i32
    %116 = tpu.dynamic_rotate %90 by %c240_i32_55 dim 1 : vector<8x256xf32>, i32 -> vector<8x256xf32>
    %cst_56 = arith.constant 0.000000e+00 : f32
    %117 = vector.broadcast %cst_56 : f32 to vector<8x256xf32>
    %118 = arith.select %24, %116, %117 : vector<8x256xi1>, vector<8x256xf32>
    %c239_i32_57 = arith.constant 239 : i32
    %119 = tpu.dynamic_rotate %90 by %c239_i32_57 dim 1 : vector<8x256xf32>, i32 -> vector<8x256xf32>
    %cst_58 = arith.constant 0.000000e+00 : f32
    %120 = vector.broadcast %cst_58 : f32 to vector<8x256xf32>
    %121 = arith.select %42, %119, %120 : vector<8x256xi1>, vector<8x256xf32>
    %cst_59 = arith.constant 0.000000e+00 : f32
    %122 = vector.broadcast %cst_59 : f32 to vector<8x256xf32>
    %123 = arith.select %24, %121, %122 : vector<8x256xi1>, vector<8x256xf32>
    %124 = tpu.concatenate %96, %99, %104, %107, %90, %110, %115, %118, %123 in 0 : vector<8x256xf32>, vector<8x256xf32>, vector<8x256xf32>, vector<8x256xf32>, vector<8x256xf32>, vector<8x256xf32>, vector<8x256xf32>, vector<8x256xf32>, vector<8x256xf32> -> vector<72x256xf32>
    %cst_60 = arith.constant dense<0.000000e+00> : vector<8x256xf32>
    %125 = tpu.matmul %91, %124, %cst_60 {dimension_numbers = #tpu.dot_dimension_numbers<[1], [0], [0], [1], [0, 0, 1, 1], [], []>} : vector<8x72xf32>, vector<72x256xf32>, vector<8x256xf32> -> vector<8x256xf32>
    %c0_61 = arith.constant 0 : index
    %c0_62 = arith.constant 0 : index
    %126 = vector.load %arg7[%c0_61, %c0_62] : memref<8x1xf32, #tpu.memory_space<vmem>>, vector<8x1xf32>
    %127 = vector.broadcast %126 : vector<8x1xf32> to vector<8x256xf32>
    %128 = arith.addf %125, %127 : vector<8x256xf32>
    %cst_63 = arith.constant 0.000000e+00 : f32
    %129 = vector.broadcast %cst_63 : f32 to vector<8x256xf32>
    %130 = arith.maximumf %128, %129 : vector<8x256xf32>
    %c0_64 = arith.constant 0 : index
    %c0_65 = arith.constant 0 : index
    %131 = vector.load %arg8[%c0_64, %c0_65] : memref<8x1xf32, #tpu.memory_space<vmem>>, vector<8x1xf32>
    %132 = vector.broadcast %131 : vector<8x1xf32> to vector<8x256xf32>
    %133 = arith.mulf %130, %132 : vector<8x256xf32>
    %c0_66 = arith.constant 0 : index
    %c0_67 = arith.constant 0 : index
    %134 = vector.load %arg9[%c0_66, %c0_67] : memref<8x1xf32, #tpu.memory_space<vmem>>, vector<8x1xf32>
    %135 = vector.broadcast %134 : vector<8x1xf32> to vector<8x256xf32>
    %136 = arith.addf %133, %135 : vector<8x256xf32>
    %137 = arith.addf %136, %1 : vector<8x256xf32>
    %c0_68 = arith.constant 0 : index
    %c0_69 = arith.constant 0 : index
    %c0_70 = arith.constant 0 : index
    %138 = vector.load %arg10[%c0_68, %c0_69, %c0_70] : memref<1x8x256xf32, #tpu.memory_space<vmem>>, vector<1x8x256xf32>
    %139 = vector.shape_cast %138 : vector<1x8x256xf32> to vector<8x256xf32>
    %140 = vector.shape_cast %137 : vector<8x256xf32> to vector<1x8x256xf32>
    tpu.vector_store %arg10[%c0_68, %c0_69, %c0_70], %140 {strides = array<i32>} : memref<1x8x256xf32, #tpu.memory_space<vmem>>, vector<1x8x256xf32>,
    return
  }
  func.func @transform_0(%arg0: i32) -> (i32, i32, i32) {
    %c0_i32 = arith.constant 0 : i32
    %c0_i32_0 = arith.constant 0 : i32
    %c0_i32_1 = arith.constant 0 : i32
    return %arg0, %c0_i32, %c0_i32_0 : i32, i32, i32
  }
  func.func @transform_1(%arg0: i32) -> (i32, i32) {
    %c0_i32 = arith.constant 0 : i32
    %c0_i32_0 = arith.constant 0 : i32
    %c0_i32_1 = arith.constant 0 : i32
    return %c0_i32, %c0_i32_0 : i32, i32
  }
  func.func @transform_2(%arg0: i32) -> (i32, i32) {
    %c0_i32 = arith.constant 0 : i32
    %c0_i32_0 = arith.constant 0 : i32
    %c0_i32_1 = arith.constant 0 : i32
    return %c0_i32, %c0_i32_0 : i32, i32
  }
  func.func @transform_3(%arg0: i32) -> (i32, i32) {
    %c0_i32 = arith.constant 0 : i32
    %c0_i32_0 = arith.constant 0 : i32
    %c0_i32_1 = arith.constant 0 : i32
    return %c0_i32, %c0_i32_0 : i32, i32
  }
  func.func @transform_4(%arg0: i32) -> (i32, i32) {
    %c0_i32 = arith.constant 0 : i32
    %c0_i32_0 = arith.constant 0 : i32
    %c0_i32_1 = arith.constant 0 : i32
    return %c0_i32, %c0_i32_0 : i32, i32
  }
  func.func @transform_5(%arg0: i32) -> (i32, i32) {
    %c0_i32 = arith.constant 0 : i32
    %c0_i32_0 = arith.constant 0 : i32
    %c0_i32_1 = arith.constant 0 : i32
    return %c0_i32, %c0_i32_0 : i32, i32
  }
  func.func @transform_6(%arg0: i32) -> (i32, i32) {
    %c0_i32 = arith.constant 0 : i32
    %c0_i32_0 = arith.constant 0 : i32
    %c0_i32_1 = arith.constant 0 : i32
    return %c0_i32, %c0_i32_0 : i32, i32
  }
  func.func @transform_7(%arg0: i32) -> (i32, i32) {
    %c0_i32 = arith.constant 0 : i32
    %c0_i32_0 = arith.constant 0 : i32
    %c0_i32_1 = arith.constant 0 : i32
    return %c0_i32, %c0_i32_0 : i32, i32
  }
  func.func @transform_8(%arg0: i32) -> (i32, i32) {
    %c0_i32 = arith.constant 0 : i32
    %c0_i32_0 = arith.constant 0 : i32
    %c0_i32_1 = arith.constant 0 : i32
    return %c0_i32, %c0_i32_0 : i32, i32
  }
  func.func @transform_9(%arg0: i32) -> (i32, i32, i32) {
    %c0_i32 = arith.constant 0 : i32
    %c0_i32_0 = arith.constant 0 : i32
    %c0_i32_1 = arith.constant 0 : i32
    return %arg0, %c0_i32, %c0_i32_0 : i32, i32, i32
  }
}

</mosaic_0001>

<bundles_post_ra>
// kernel: tpu_custom_call.1
= control target key start
LH: loop header
LB: loop body
LE: loop exit
PB: predicated region body
PF: predicated region fallthrough
CT: control target
= control target key end

     0   :  { %14 = vsyncpa [#allocation3], 0  ;;  %s1463_s0 = inlined_call_operand.vmem [shape: f32[2,8,256], index: 0, kind: input, shape index: {}]   ;;  %s1464_s1 = inlined_call_operand.vmem [shape: f32[8,72], index: 1, kind: input, shape index: {}]   ;;  %s1465_s2 = inlined_call_operand.vmem [shape: f32[8,1], index: 2, kind: input, shape index: {}]   ;;  %s1466_s3 = inlined_call_operand.vmem [shape: f32[8,1], index: 3, kind: input, shape index: {}]   ;;  %s1467_s4 = inlined_call_operand.vmem [shape: f32[8,1], index: 4, kind: input, shape index: {}]   ;;  %s1468_s5 = inlined_call_operand.vmem [shape: f32[8,72], index: 5, kind: input, shape index: {}]   ;;  %s1469_s6 = inlined_call_operand.vmem [shape: f32[8,1], index: 6, kind: input, shape index: {}]   ;;  %s1470_s7 = inlined_call_operand.vmem [shape: f32[8,1], index: 7, kind: input, shape index: {}]   ;;  %s1471_s8 = inlined_call_operand.vmem [shape: f32[8,1], index: 8, kind: input, shape index: {}]   ;;  %s1472_s9 = inlined_call_operand.hbm [shape: f32[2,8,256], index: 9, kind: output, shape index: {}]  }
   0x1   :  { %16 = vsyncpa [#allocation3 + $0x1], 0  ;;  %s1043_s30 = smov 0   ;;  %s1045_s10 = smov 0  }
   0x2   :  { %s1047_s11 = smov 0   ;;  %s1049_s12 = smov 0  }
   0x3 LB: > { %s1064_s13 = sadd.s32 4294967295, %s977_s12   ;;  %s819_s14 = sadd.s32 4294967294, %s977_s12   ;;  %s977_s12 = sphi %s1049_s12, %s1523_s12   ;;  %s973_s11 = sphi %s1047_s11, %s1522_s11   ;;  %s969_s10 = sphi %s1045_s10, %s1521_s10   ;;  %s965_s30 = sphi %s1043_s30, %s1520_s30  }
   0x4   : > { %s1068_s15 = sadd.s32 1, %s977_s12   ;;  %s223_s16 = sadd.s32 1, %s973_s11 }
   0x5   : > { %s220_s17 = ssub.s32 %s977_s12, %s1068_s15  ;;  %p233_p0 = scmp.ne.s32.totalorder %s973_s11, %s969_s10 }
   0x6   : > { %p221_p1 = scmp.eq.s32.totalorder %s220_s17, 0  ;;  %p234_p2 = scmp.eq.s32.totalorder %s1064_s13, 1 }
   0x7   : > { %p239_p3 = scmp.ne.s32.totalorder %s969_s10, %s965_s30  ;;  %p240_p4 = scmp.eq.s32.totalorder %s819_s14, 1 }
   0x8   : > { %s1079_s18 = scalar_select %p221_p1, %s973_s11, %s223_s16  }
   0x9   : > { %p1081_p5 = por %p234_p2, %p233_p0  ;;  %p1085_p6 = por %p240_p4, %p239_p3 }
   0xa   : > { %p822_p7 = scmp.ge.s32.totalorder %s977_s12, 1  ;;  %p290_p8 = scmp.lt.s32.totalorder %s977_s12, 3 }
   0xc   : > { %p291_p9 = pnand %p822_p7, %p290_p8 }
   0xd   : > { %p326_p10 = scmp.lt.s32.totalorder (!%p291_p9), %s1064_s13, 1  ;;  %s979_s26 = smov (!%p291_p9), 111  }
   0xe   : > { %294 = sbr.rel (%p291_p9) target bundleno = 747 (0x2eb), region = 56  ;;  %s980_s27 = smov (!%p291_p9), 127  }
   0xf   : > { %s981_s28 = smov (!%p291_p9), 112   ;;  %s982_s29 = smov (!%p291_p9), 113  }
  0x10   : > { %s983_s14 = smov (!%p291_p9), 97   ;;  %s1473_s16 = smov (!%p291_p9), 15  }
  0x11   : > { %s1475_s17 = smov (!%p291_p9), 1   ;;  %s990_s23 = smov (!%p291_p9), 17  }
  0x12   : > { %s1502_s24 = smov (!%p291_p9), 1  }
  0x13   : > { %s327_s21 = scalar_select %p326_p10, %s1064_s13, 1  ;;  %v986_v2 = vmov 0.0   ;;  %v988_v3 = vmov 0   ;;  %v554_v4 = vld [vmem:[%s1466_s3] sm:$0xff]  ;;  %v333_v7 = vlaneseq  ;;  %vm991_vm6 = vmmov 1  }
  0x14   : > { %545 = vmatprep.mubr.f32.mxu0 %v986_v2  ;;  %716 = vmatprep.mubr.f32.mxu1 %v986_v2  ;;  %v471_v5 = vld [vmem:[%s1465_s2] sm:$0xff] }
  0x15   : > { %s861_s22 = sshll.u32 %s327_s21, 4  ;;  %s987_s21 = smov 31   ;;  %916 = vset.pattern.permute.xlu1 %v988_v3  ;;  %915 = vset.pattern.permute.xlu0 %v988_v3  ;;  %v562_v6 = vld [vmem:[%s1467_s4] sm:$0xff]  ;;  %v1145_v8 = vand.u32 127, %v333_v7 }
  0x16   : > { %s330_s25 = scalar_lea.vmem %s1463_s0, %s861_s22  ;;  %s989_s22 = smov 16   ;;  %v643_v41 = vld [vmem:[%s1469_s6] sm:$0xff] }
  0x17   : > { %v1096_v0 = vld [vmem:[%s330_s25] sm:$0xff]  ;;  %v1102_v1 = vld [vmem:[%s330_s25 + $0x8] sm:$0xff]  ;;  %v1148_v9 = vadd.s32 128, %v1145_v8  ;;  %v338_v11 = vand.u32 15, %v1145_v8  ;;  %v336_v13 = vshra.s32 %v1145_v8, 4  ;;  %vm464_vm4 = vcmp.lt.s32.totalorder %v1145_v8, 111 }
  0x18   : > { %460 = vrot.lane.b32.xlu1 %v1096_v0, %s979_s26  ;;  %431 = vrot.lane.b32.xlu0 %v1096_v0, %s980_s27  ;;  %vm1478_vm5 = vcmp.lt.s32.totalorder %v1145_v8, 127  ;;  %vm1482_vm13 = vcmp.lt.s32.totalorder %v1145_v8, 112  ;;  %s1503_s25 = smov 15  }
  0x19   : > { %v339_v10 = vand.u32 15, %v1148_v9  ;;  %v337_v12 = vshra.s32 %v1148_v9, 4  ;;  %v1156_v15 = vadd.s32 1, %v338_v11  ;;  %v348_v17 = vadd.s32 1, %v336_v13 }
  0x1a   : > { %v1207_v35 = vadd.s32 4294967295, %v338_v11  ;;  %v340_v57 = vadd.s32 4294967295, %v336_v13 }
  0x1b   : > { %v1154_v14 = vadd.s32 1, %v339_v10  ;;  %v349_v16 = vadd.s32 1, %v337_v12  ;;  %vm368_vm1 = vcmp.lt.s32.totalorder %v1156_v15, 16  ;;  %vm350_vm8 = vcmp.ge.s32.totalorder %v348_v17, 0 }
  0x1c   : > { %462 = vrot.lane.b32.xlu1 %v1102_v1, %s979_s26  ;;  %433 = vrot.lane.b32.xlu0 %v1102_v1, %s980_s27  ;;  %vm352_vm9 = vcmp.lt.s32.totalorder %v348_v17, 16  ;;  %vm1176_vm10 = vmxor %vm368_vm1, %vm991_vm6  ;;  %v1203_v32 = vadd.s32 4294967295, %v339_v10  ;;  %vm1480_vm15 = vcmp.ge.s32.totalorder %v1207_v35, 0  ;;  %v341_v54 = vadd.s32 4294967295, %v337_v12 }
  0x1d   : > { %vm369_vm0 = vcmp.lt.s32.totalorder %v1154_v14, 16  ;;  %vm351_vm2 = vcmp.ge.s32.totalorder %v349_v16, 0  ;;  %vm353_vm3 = vcmp.lt.s32.totalorder %v349_v16, 16  ;;  %vm1192_vm12 = vmand %vm350_vm8, %vm352_vm9 }
  0x1e   : > { %vm1169_vm7 = vmxor %vm369_vm0, %vm991_vm6  ;;  %vm1479_vm14 = vcmp.ge.s32.totalorder %v1203_v32, 0 }
  0x1f   : > { %vm1180_vm11 = vmand %vm351_vm2, %vm353_vm3  ;;  %vm1481_vm2 = vcmp.lt.s32.totalorder %v1145_v8, 113  ;;  %vm444_vm3 = vcmp.lt.s32.totalorder %v1145_v8, 97 }
  0x20   : > { %453 = vrot.lane.b32.xlu1 %v1102_v1, %s981_s28  ;;  %451 = vrot.lane.b32.xlu0 %v1096_v0, %s981_s28  ;;  %vm1224_vm8 = vmxor %vm1479_vm14, %vm991_vm6  ;;  %vm345_vm14 = vcmp.lt.s32.totalorder %v341_v54, 16 }
  0x21   : > { %vm1231_vm9 = vmxor %vm1480_vm15, %vm991_vm6  ;;  %vm1477_vm6 = vcmp.lt.s32.totalorder %v1145_v8, 15  ;;  %vm342_vm15 = vcmp.ge.s32.totalorder %v340_v57, 0 }
  0x24   : > { %424 = vrot.lane.b32.xlu1 %v1102_v1, %s982_s29  ;;  %422 = vrot.lane.b32.xlu0 %v1096_v0, %s982_s29 }
  0x28   : > { %442 = vrot.lane.b32.xlu1 %v1102_v1, %s983_s14  ;;  %440 = vrot.lane.b32.xlu0 %v1096_v0, %s983_s14 }
  0x2c   : > { %406 = vrot.lane.b32.xlu1 %v1102_v1, %s1473_s16  ;;  %404 = vrot.lane.b32.xlu0 %v1096_v0, %s1473_s16  ;;  %s323_s16 = sand.u32 1, %s969_s10  }
  0x2d   : > { %s746_s14 = scalar_lea.sflag [#allocation3], %s323_s16 }
  0x30   : > { %386 = vrot.lane.b32.xlu1 %v1102_v1, %s1475_s17  ;;  %384 = vrot.lane.b32.xlu0 %v1096_v0, %s1475_s17  ;;  %s823_s17 = sshll.u32 %s323_s16, 4 }
  0x34   : > { %413 = vrot.lane.b32.xlu1 %v1102_v1, %s987_s21  ;;  %411 = vrot.lane.b32.xlu0 %v1096_v0, %s987_s21 }
  0x38   : > { %397 = vrot.lane.b32.xlu1 %v1102_v1, %s989_s22  ;;  %395 = vrot.lane.b32.xlu0 %v1096_v0, %s989_s22 }
  0x3c   : > { %379 = vrot.lane.b32.xlu1 %v1102_v1, %s990_s23  ;;  %377 = vrot.lane.b32.xlu0 %v1096_v0, %s990_s23 }
  0x40   : > { %557 = vperm.xlu1 %916, %v554_v4   ;;  %474 = vperm.xlu0 %915, %v471_v5  }
  0x44   : > { %565 = vperm.xlu1 %916, %v562_v6  }
  0x8a   : > { %v461_v18 = vpop.permute.xlu1 %460  ;;  %v432_v19 = vpop.permute.xlu0 %431 }
  0x8e   : > { %v463_v22 = vpop.permute.xlu1 %462  ;;  %v434_v23 = vpop.permute.xlu0 %433 }
  0x8f   : > { %v465_v25 = vsel %vm464_vm4, %v461_v18, %v463_v22  ;;  %v466_v26 = vsel %vm464_vm4, %v463_v22, %v461_v18  ;;  %v436_v27 = vsel %vm1478_vm5, %v432_v19, %v434_v23  ;;  %v437_v28 = vsel %vm1478_vm5, %v434_v23, %v432_v19  ;;  %v376_v23 = vld [vmem:[%s1464_s1] sm:$0xff] }
  0x90   : > { %v468_v30 = vsel %vm1169_vm7, %v437_v28, %v466_v26  ;;  %v467_v31 = vsel %vm1176_vm10, %v436_v27, %v465_v25  ;;  %vm343_vm5 = vcmp.ge.s32.totalorder %v341_v54, 0 }
  0x91   : > { %826 = vmatprep.subr.msk.mxu0 %vm1180_vm11, %v468_v30 }
  0x92   : > { %v454_v33 = vpop.permute.xlu1 %453  ;;  %827 = vmatpush1.msk.msra.mxu0 %vm1192_vm12, %v467_v31  ;;  %v452_v34 = vpop.permute.xlu0 %451 }
  0x93   : > { %v456_v36 = vsel %vm1482_vm13, %v452_v34, %v454_v33  ;;  %v457_v37 = vsel %vm1482_vm13, %v454_v33, %v452_v34  ;;  %vm1272_vm13 = vmand %vm343_vm5, %vm345_vm14  ;;  %vm399_vm5 = vcmp.lt.s32.totalorder %v1145_v8, 16  ;;  %vm1504_vm14 = vcmp.lt.s32.totalorder %v1145_v8, 112 }
  0x94   : > { %828 = vmatprep.subr.msk.mxu0 %vm1180_vm11, %v457_v37 }
  0x95   : > { %829 = vmatpush1.msk.msra.mxu0 %vm1192_vm12, %v456_v36 }
  0x96   : > { %v425_v38 = vpop.permute.xlu1 %424  ;;  %v423_v39 = vpop.permute.xlu0 %422 }
  0x97   : > { %v427_v44 = vsel %vm1481_vm2, %v423_v39, %v425_v38  ;;  %v428_v45 = vsel %vm1481_vm2, %v425_v38, %v423_v39  ;;  %vm344_vm2 = vcmp.lt.s32.totalorder %v340_v57, 16 }
  0x9a   : > { %v443_v42 = vpop.permute.xlu1 %442  ;;  %v441_v43 = vpop.permute.xlu0 %440 }
  0x9b   : > { %v445_v46 = vsel %vm444_vm3, %v441_v43, %v443_v42  ;;  %v446_v47 = vsel %vm444_vm3, %v443_v42, %v441_v43  ;;  %vm1483_vm3 = vcmp.lt.s32.totalorder %v1145_v8, 1  ;;  %v725_v42 = vld [vmem:[%s1470_s7] sm:$0xff] }
  0x9c   : > { %v448_v48 = vsel %vm1224_vm8, %v446_v47, %v428_v45  ;;  %v447_v49 = vsel %vm1231_vm9, %v445_v46, %v427_v44  ;;  %v733_v43 = vld [vmem:[%s1471_s8] sm:$0xff] }
  0x9d   : > { %830 = vmatprep.subr.msk.mxu0 %vm1180_vm11, %v448_v48 }
  0x9e   : > { %v407_v50 = vpop.permute.xlu1 %406  ;;  %831 = vmatpush1.msk.msra.mxu0 %vm1192_vm12, %v447_v49  ;;  %v405_v51 = vpop.permute.xlu0 %404 }
  0x9f   : > { %v409_v52 = vsel %vm1477_vm6, %v405_v51, %v407_v50  ;;  %v410_v53 = vsel %vm1477_vm6, %v407_v50, %v405_v51  ;;  %vm415_vm6 = vcmp.lt.s32.totalorder %v1145_v8, 31 }
  0xa0   : > { %v439_v55 = vsel %vm1169_vm7, %v409_v52, %v437_v28  ;;  %v438_v56 = vsel %vm1176_vm10, %v410_v53, %v436_v27 }
  0xa1   : > { %501 = vmatprep.subr.mxu0 %v439_v55 }
  0xa2   : > { %v387_v58 = vpop.permute.xlu1 %386  ;;  %502 = vmatpush1.msra.mxu0 %v438_v56  ;;  %v385_v59 = vpop.permute.xlu0 %384 }
  0xa3   : > { %v389_v60 = vsel %vm1483_vm3, %v385_v59, %v387_v58  ;;  %v390_v61 = vsel %vm1483_vm3, %v387_v58, %v385_v59  ;;  %503 = vmatprep.subr.mxu0 %v1102_v1  ;;  %vm1280_vm3 = vmand %vm342_vm15, %vm344_vm2 }
  0xa4   : > { %504 = vmatpush1.msra.mxu0 %v1096_v0  ;;  %v430_v62 = vsel %vm1224_vm8, %v428_v45, %v389_v60  ;;  %v429_v63 = vsel %vm1231_vm9, %v427_v44, %v390_v61  ;;  %vm1505_vm15 = vmmov %vm1504_vm14 }
  0xa5   : > { %505 = vmatprep.subr.mxu0 %v430_v62 }
  0xa6   : > { %v414_v2 = vpop.permute.xlu1 %413  ;;  %506 = vmatpush1.msra.mxu0 %v429_v63  ;;  %v412_v3 = vpop.permute.xlu0 %411 }
  0xa7   : > { %v416_v5 = vsel %vm415_vm6, %v412_v3, %v414_v2  ;;  %v417_v6 = vsel %vm415_vm6, %v414_v2, %v412_v3  ;;  %vm1510_vm6 = vcmp.lt.s32.totalorder %v1145_v8, 127 }
  0xa8   : > { %v419_v9 = vsel %vm1169_vm7, %v416_v5, %v409_v52  ;;  %v418_v10 = vsel %vm1176_vm10, %v417_v6, %v410_v53  ;;  %vm381_vm7 = vcmp.lt.s32.totalorder %v1145_v8, 17  ;;  %vm477_vm10 = vcmask 588800  }
  0xa9   : > { %832 = vmatprep.subr.msk.mxu0 %vm1272_vm13, %v419_v9 }
  0xaa   : > { %v398_v11 = vpop.permute.xlu1 %397  ;;  %833 = vmatpush1.msk.msra.mxu0 %vm1280_vm3, %v418_v10  ;;  %v396_v12 = vpop.permute.xlu0 %395 }
  0xab   : > { %v400_v13 = vsel %vm399_vm5, %v396_v12, %v398_v11  ;;  %v401_v16 = vsel %vm399_vm5, %v398_v11, %v396_v12 }
  0xac   : > { %834 = vmatprep.subr.msk.mxu0 %vm1272_vm13, %v400_v13 }
  0xad   : > { %835 = vmatpush1.msk.msra.mxu0 %vm1280_vm3, %v401_v16 }
  0xae   : > { %v380_v17 = vpop.permute.xlu1 %379  ;;  %v378_v18 = vpop.permute.xlu0 %377 }
  0xaf   : > { %v382_v19 = vsel %vm381_vm7, %v378_v18, %v380_v17  ;;  %v383_v20 = vsel %vm381_vm7, %v380_v17, %v378_v18 }
  0xb0   : > { %v392_v21 = vsel %vm1224_vm8, %v389_v60, %v382_v19  ;;  %v391_v22 = vsel %vm1231_vm9, %v390_v61, %v383_v20  ;;  %vm1508_vm8 = vcmp.ge.s32.totalorder %v1207_v35, 0  ;;  %vm1509_vm9 = vcmp.ge.s32.totalorder %v1203_v32, 0 }
  0xb1   : > { %836 = vmatprep.subr.msk.mxu0 %vm1272_vm13, %v392_v21 }
  0xb2   : > { %837 = vmatpush1.msk.msra.mxu0 %vm1280_vm3, %v391_v22 }
  0xb3   : > { %838 = vmatmul.mubr.msk.f32.vlgmr.msra.gmra.mxu0 %vm477_vm10, %v376_v23  ;;  %v570_v23 = vld [vmem:[%s1468_s5] sm:$0xff] }
  0xbb   : > { %v475_v25 = vpop.permute.xlu0 %474  ;;  %v558_v26 = vpop.permute.xlu1 %557 }
  0xbf   : > { %v566_v37 = vpop.permute.xlu1 %565 }
 0x173   : > { %v547_v27 = vpop.f32.mrf.mxu0 }
 0x174   : > { %v548_v28 = vadd.f32 %v547_v27, %v475_v25 }
 0x175   : > { %v549_v30 = vpop.f32.mrf.mxu0 }
 0x176   : > { %v552_v31 = vmax.f32 %v548_v28, 0.0  ;;  %v550_v33 = vadd.f32 %v549_v30, %v475_v25 }
 0x178   : > { %v553_v34 = vmax.f32 %v550_v33, 0.0  ;;  %v560_v36 = vmul.f32 %v558_v26, %v552_v31 }
 0x17a   : > { %v561_v38 = vmul.f32 %v558_v26, %v553_v34  ;;  %v568_v39 = vadd.f32 %v566_v37, %v560_v36 }
 0x17c   : > { %v569_v40 = vadd.f32 %v566_v37, %v561_v38  ;;  %633 = vrot.lane.b32.xlu0 %v568_v39, %s979_s26 }
 0x17e   : > { %635 = vrot.lane.b32.xlu1 %v569_v40, %s979_s26 }
 0x180   : > { %625 = vrot.lane.b32.xlu0 %v568_v39, %s981_s28 }
 0x182   : > { %627 = vrot.lane.b32.xlu1 %v569_v40, %s981_s28 }
 0x184   : > { %615 = vrot.lane.b32.xlu0 %v568_v39, %s982_s29 }
 0x186   : > { %617 = vrot.lane.b32.xlu1 %v569_v40, %s982_s29 }
 0x188   : > { %607 = vrot.lane.b32.xlu0 %v568_v39, %s980_s27 }
 0x18a   : > { %609 = vrot.lane.b32.xlu1 %v569_v40, %s980_s27 }
 0x18c   : > { %599 = vrot.lane.b32.xlu0 %v568_v39, %s1502_s24 }
 0x18e   : > { %601 = vrot.lane.b32.xlu1 %v569_v40, %s1502_s24  ;;  %s862_s24 = sshll.u32 %s1064_s13, 8  ;;  %s992_s13 = smov [#allocation2]  }
 0x18f   : > { %s758_s29 = scalar_lea.hbm %s1472_s9, %s862_s24 }
 0x190   : > { %589 = vrot.lane.b32.xlu0 %v568_v39, %s1503_s25 }
 0x192   : > { %591 = vrot.lane.b32.xlu1 %v569_v40, %s1503_s25  ;;  %s325_s25 = scalar_lea.vmem [#allocation2], %s823_s17 }
 0x193   : > { %s760_s26 = sshll.u32 %s325_s25, 4  ;;  %s761_s26 = int_to_ptr.vmem [resolvable:$true] %s760_s26 }
 0x194   : > { %581 = vrot.lane.b32.xlu0 %v568_v39, %s989_s22  ;;  %s917_s21 = scalar_lea.vmem %s761_s26, 256 }
 0x195   : > { %p918_p11 = scmp.ne.s32.totalorder %s761_s26, %s917_s21 }
 0x196   : > { %583 = vrot.lane.b32.xlu1 %v569_v40, %s989_s22  ;;  %s921_s22 = sshll.u32 %s992_s13, 4  ;;  %s922_s22 = int_to_ptr.vmem [resolvable:$false] %s921_s22 }
 0x197   : > { %p919_p12 = pnand %p918_p11, %p1081_p5  ;;  %p924_p0 = scmp.lt.s32.totalorder %s761_s26, %s922_s22 }
 0x198   : > { %571 = vrot.lane.b32.xlu0 %v568_v39, %s990_s23 }
 0x199   : > { %p920_p13 = pneg %p919_p12 }
 0x19a   : > { %573 = vrot.lane.b32.xlu1 %v569_v40, %s990_s23  ;;  %s923_s23 = scalar_lea.vmem %s922_s22, 512 }
 0x19b   : > { %p925_p1 = scmp.lt.s32.totalorder %s923_s23, %s917_s21 }
 0x19c   : > { %646 = vperm.xlu0 %915, %v643_v41  }
 0x19d   : > { %p926_p2 = por %p925_p1, %p924_p0 }
 0x19e   : > { %728 = vperm.xlu1 %916, %v725_v42  }
 0x19f   : > { %p927_p3 = pnand %p926_p2, %p920_p13 }
 0x1a0   : > { %736 = vperm.xlu0 %915, %v733_v43  }
 0x1ee   : > { %v634_v44 = vpop.permute.xlu0 %633 }
 0x1f0   : > { %v636_v45 = vpop.permute.xlu1 %635 }
 0x1f1   : > { %v637_v46 = vsel %vm464_vm4, %v634_v44, %v636_v45  ;;  %v638_v47 = vsel %vm464_vm4, %v636_v45, %v634_v44  ;;  %vm1506_vm4 = vcmp.lt.s32.totalorder %v1145_v8, 113 }
 0x1f2   : > { %v626_v48 = vpop.permute.xlu0 %625  ;;  %v640_v49 = vsel %vm369_vm0, %v638_v47, 0.0  ;;  %v639_v50 = vsel %vm368_vm1, %v637_v46, 0.0  ;;  %vm1507_vm2 = vmmov %vm1506_vm4 }
 0x1f3   : > { %839 = vmatprep.subr.msk.mxu1 %vm1180_vm11, %v640_v49 }
 0x1f4   : > { %v628_v51 = vpop.permute.xlu1 %627  ;;  %840 = vmatpush1.msk.msra.mxu1 %vm1192_vm12, %v639_v50 }
 0x1f5   : > { %v629_v52 = vsel %vm1504_vm14, %v626_v48, %v628_v51  ;;  %v630_v53 = vsel %vm1505_vm15, %v628_v51, %v626_v48  ;;  %vm1511_vm14 = vmmov %vm1510_vm6 }
 0x1f6   : > { %841 = vmatprep.subr.msk.mxu1 %vm1180_vm11, %v630_v53  ;;  %v616_v54 = vpop.permute.xlu0 %615  ;;  %vm1514_vm15 = vmmov %vm1509_vm9 }
 0x1f7   : > { %842 = vmatpush1.msk.msra.mxu1 %vm1192_vm12, %v629_v52 }
 0x1f8   : > { %v618_v55 = vpop.permute.xlu1 %617 }
 0x1f9   : > { %v619_v56 = vsel %vm1506_vm4, %v616_v54, %v618_v55  ;;  %v620_v57 = vsel %vm1507_vm2, %v618_v55, %v616_v54  ;;  %vm1515_vm4 = vmmov %vm1508_vm8  ;;  %vm1516_vm2 = vcmp.lt.s32.totalorder %v1145_v8, 15 }
 0x1fa   : > { %v621_v58 = vsel %vm1508_vm8, %v619_v56, 0.0  ;;  %v622_v59 = vsel %vm1509_vm9, %v620_v57, 0.0  ;;  %v608_v60 = vpop.permute.xlu0 %607  ;;  %vm1517_vm8 = vmmov %vm1516_vm2 }
 0x1fb   : > { %843 = vmatprep.subr.msk.mxu1 %vm1180_vm11, %v622_v59  ;;  %vm1512_vm11 = vcmp.lt.s32.totalorder %v1145_v8, 1 }
 0x1fc   : > { %v610_v61 = vpop.permute.xlu1 %609  ;;  %844 = vmatpush1.msk.msra.mxu1 %vm1192_vm12, %v621_v58  ;;  %vm1513_vm12 = vmmov %vm1512_vm11 }
 0x1fd   : > { %v611_v62 = vsel %vm1510_vm6, %v608_v60, %v610_v61  ;;  %v612_v63 = vsel %vm1511_vm14, %v610_v61, %v608_v60 }
 0x1fe   : > { %845 = vmatprep.subr.msk.mxu1 %vm369_vm0, %v612_v63  ;;  %v600_v2 = vpop.permute.xlu0 %599 }
 0x1ff   : > { %846 = vmatpush1.msk.msra.mxu1 %vm368_vm1, %v611_v62 }
 0x200   : > { %v602_v3 = vpop.permute.xlu1 %601  ;;  %674 = vmatprep.subr.mxu1 %v569_v40 }
 0x201   : > { %v603_v24 = vsel %vm1512_vm11, %v600_v2, %v602_v3  ;;  %v604_v29 = vsel %vm1513_vm12, %v602_v3, %v600_v2  ;;  %675 = vmatpush1.msra.mxu1 %v568_v39 }
 0x202   : > { %847 = vmatprep.subr.msk.mxu1 %vm1514_vm15, %v603_v24  ;;  %v590_v5 = vpop.permute.xlu0 %589 }
 0x203   : > { %848 = vmatpush1.msk.msra.mxu1 %vm1515_vm4, %v604_v29 }
 0x204   : > { %v592_v6 = vpop.permute.xlu1 %591 }
 0x205   : > { %v593_v9 = vsel %vm1516_vm2, %v590_v5, %v592_v6  ;;  %v594_v10 = vsel %vm1517_vm8, %v592_v6, %v590_v5 }
 0x206   : > { %v595_v11 = vsel %vm368_vm1, %v594_v10, 0.0  ;;  %v596_v12 = vsel %vm369_vm0, %v593_v9, 0.0  ;;  %v582_v13 = vpop.permute.xlu0 %581  ;;  %vm1518_vm0 = vmmov %vm1515_vm4 }
 0x207   : > { %849 = vmatprep.subr.msk.mxu1 %vm1272_vm13, %v596_v12  ;;  %vm1519_vm1 = vmmov %vm1509_vm9 }
 0x208   : > { %v584_v16 = vpop.permute.xlu1 %583  ;;  %850 = vmatpush1.msk.msra.mxu1 %vm1280_vm3, %v595_v11 }
 0x209   : > { %v585_v17 = vsel %vm399_vm5, %v582_v13, %v584_v16  ;;  %v586_v18 = vsel %vm399_vm5, %v584_v16, %v582_v13 }
 0x20a   : > { %851 = vmatprep.subr.msk.mxu1 %vm1272_vm13, %v585_v17  ;;  %v572_v14 = vpop.permute.xlu0 %571 }
 0x20b   : > { %852 = vmatpush1.msk.msra.mxu1 %vm1280_vm3, %v586_v18 }
 0x20c   : > { %v574_v15 = vpop.permute.xlu1 %573 }
 0x20d   : > { %v575_v19 = vsel %vm381_vm7, %v572_v14, %v574_v15  ;;  %v576_v20 = vsel %vm381_vm7, %v574_v15, %v572_v14 }
 0x20e   : > { %v577_v21 = vsel %vm1518_vm0, %v576_v20, 0.0  ;;  %v578_v22 = vsel %vm1519_vm1, %v575_v19, 0.0 }
 0x20f   : > { %853 = vmatprep.subr.msk.mxu1 %vm1272_vm13, %v578_v22 }
 0x210   : > { %854 = vmatpush1.msk.msra.mxu1 %vm1280_vm3, %v577_v21 }
 0x211   : > { %855 = vmatmul.mubr.msk.f32.vlgmr.msra.gmra.mxu1 %vm477_vm10, %v570_v23 }
 0x217   : > { %v647_v8 = vpop.permute.xlu0 %646 }
 0x219   : > { %v729_v28 = vpop.permute.xlu1 %728 }
 0x21b   : > { %v737_v33 = vpop.permute.xlu0 %736 }
 0x2d1   : > { %v718_v35 = vpop.f32.mrf.mxu1 }
 0x2d2   : > { %v719_v25 = vadd.f32 %v718_v35, %v647_v8 }
 0x2d3   : > { %v720_v26 = vpop.f32.mrf.mxu1 }
 0x2d4   : > { %v723_v32 = vmax.f32 %v719_v25, 0.0  ;;  %v721_v27 = vadd.f32 %v720_v26, %v647_v8 }
 0x2d6   : > { %v731_v30 = vmul.f32 %v729_v28, %v723_v32  ;;  %v724_v31 = vmax.f32 %v721_v27, 0.0 }
 0x2d8   : > { %v739_v4 = vadd.f32 %v737_v33, %v731_v30  ;;  %v732_v34 = vmul.f32 %v729_v28, %v724_v31 }
 0x2da   : > { %v741_v7 = vadd.f32 %v739_v4, %v1096_v0  ;;  %v740_v36 = vadd.f32 %v737_v33, %v732_v34 }
 0x2dc   : > { %v742_v37 = vadd.f32 %v740_v36, %v1102_v1  ;;  %743 = vst [vmem:[%s325_s25] sm:$0xff] %v741_v7 }
 0x2de   : > { %744 = vst [vmem:[%s325_s25 + $0x8] sm:$0xff] %v742_v37 }
 0x2df   : > { %930 = shalt.err (!%p927_p3)
}
 0x2e0   : > { %s931_s17 = scalar_lea.hbm %s758_s29, 256  ;;  %s935_s25 = scalar_lea.hbm %s1472_s9, 512 }
 0x2e1   : > { %p932_p4 = scmp.ne.s32.totalorder %s758_s29, %s931_s17  ;;  %p936_p9 = scmp.lt.s32.totalorder %s758_s29, %s1472_s9 }
 0x2e2   : > { %p937_p10 = scmp.lt.s32.totalorder %s935_s25, %s931_s17 }
 0x2e3   : > { %p933_p7 = pnand %p932_p4, %p1081_p5 }
 0x2e4   : > { %p938_p11 = por %p937_p10, %p936_p9 }
 0x2e5   : > { %p934_p8 = pneg %p933_p7 }
 0x2e7   : > { %p939_p12 = pnand %p938_p11, %p934_p8 }
 0x2e9   : > { %942 = shalt.err (!%p939_p12)
}
 0x2ea   : > { %863 = dma.vmem_to_hbm [thread:$0]  (%p1081_p5), %s761_s26, 256, %s758_s29, %s746_s14  }
 0x2eb PF: > { %p869_p13 = scmp.ge.s32.totalorder %s977_s12, 2  ;;  %s772_s21 = sand.u32 1, %s965_s30  }
 0x2ec   : > { %s773_s13 = scalar_lea.sflag [#allocation3], %s772_s21 }
 0x2ed   : > { %p866_p0 = pnand %p869_p13, %p1085_p6 }
 0x2ef   : > { %p867_p1 = pneg %p866_p0 }
 0x2f1   : > { %960 = dma.done.wait (%p867_p1), %s773_s13, 256  }
 0x2f2   : > { %962 = vsyncadd (%p867_p1), %s773_s13, 4294967040  ;;  %p19_p2 = scmp.ge.s32.totalorder %s1068_s15, 4   ;;  %s1520_s30 = smov %s969_s10 }
 0x2f3   : > { %s1521_s10 = smov %s973_s11  ;;  %s1522_s11 = smov %s1079_s18 }
 0x2f4   : > { %s1523_s12 = smov %s1068_s15  ;;  %21 = sbr.rel (!%p19_p2) target bundleno = 3 (0x3), region = 91 }
 0x2f9   :  { %778 = vsyncpa [#allocation3], 1 }
 0x2fa   :  { %780 = vsyncpa [#allocation3 + $0x1], 1 }

</bundles_post_ra>
